<compile_context>
chip_gen: v6e
topology: v6e:2x2x1
jax: 0.10.0
libtpu: 0.0.40
codegen_flags: <defaults>
</compile_context>

<pallas_src>
import numpy as np
import jax
import jax.numpy as jnp
from jax.experimental import pallas as pl
from jax.experimental.pallas import tpu as pltpu


def _upsample_kernel(x_ref, sel_ref, o_ref):
    # x_ref: (rt, tt); sel_ref: (tt, tt*P) with sel[t, j] = (j // P == t); o_ref: (rt, tt*P)
    x = x_ref[...].astype(jnp.float32)
    sel = sel_ref[...]
    out = jnp.dot(x, sel, preferred_element_type=jnp.float32)  # out[r, j] = x[r, j // P]
    o_ref[...] = out.astype(o_ref.dtype)


def _maxunpool_kernel(x_ref, idx_ref, sel_ref, o_ref):
    # Window-local max-unpool scatter:
    #   out[r, j] = x[r, j // P]  if  idx[r, j // P] == j  else 0
    # (valid for indices produced by MaxPool1d with kernel_size == stride == pool_size;
    #  exact as long as T*P < 2**24 so indices are representable in f32).
    x = x_ref[...].astype(jnp.float32)        # (rt, tt)
    idx = idx_ref[...].astype(jnp.float32)    # (rt, tt) absolute output positions
    sel = sel_ref[...]                        # (tt, tp)
    rt = x.shape[0]
    tp = sel.shape[1]

    x_rep = jnp.dot(x, sel, preferred_element_type=jnp.float32)     # x[r, j // P]
    idx_rep = jnp.dot(idx, sel, preferred_element_type=jnp.float32)  # idx[r, j // P]

    j_local = jax.lax.broadcasted_iota(jnp.int32, (rt, tp), 1)
    j_abs = (pl.program_id(1) * tp + j_local).astype(jnp.float32)

    out = jnp.where(idx_rep == j_abs, x_rep, jnp.zeros_like(x_rep))
    o_ref[...] = out.astype(o_ref.dtype)


def _pick_tile(dim, align, target):
    """Largest multiple of `align` that divides `dim` and is <= `target`; falls back to
    the full dimension when it is not `align`-divisible (full-dim blocks are legal)."""
    if dim % align != 0:
        return dim
    best = align
    t = 2 * align
    limit = min(dim, target)
    while t <= limit:
        if dim % t == 0:
            best = t
        t += align
    return best


def unpool1d(x, pool_size, seq_len=None, indices=None):
    """Pallas port of Unpool1d.forward. x: (B, C, T)."""
    if pool_size < 2:
        return x, seq_len

    B, C, T = x.shape
    P = int(pool_size)
    TP = T * P
    R = B * C

    x2 = x.reshape(R, T)

    # Tiles: rows in multiples of 8 sublanes, time in multiples of 128 lanes; cap the
    # output tile width (tt*P) so blocks fit comfortably in v7x's 64 MiB VMEM.
    rt = _pick_tile(R, 8, 256)
    tt_target = max(128, min(512, (2048 // P) // 128 * 128))
    tt = _pick_tile(T, 128, tt_target)
    grid = (R // rt, T // tt)
    tp = tt * P

    # Constant block-selection matrix sel[t, j] = (j // P == t), passed in once with a
    # constant index_map so it is DMA'd a single time and stays resident in VMEM
    # (hoists the per-step iota/compare work out of the grid loop).
    sel = (jnp.arange(tp, dtype=jnp.int32)[None, :] // P
           == jnp.arange(tt, dtype=jnp.int32)[:, None]).astype(jnp.float32)

    itemsize = jnp.dtype(x.dtype).itemsize
    n_in = 1 if indices is None else 2
    # double-buffered in/out blocks + resident sel, plus headroom
    vmem_est = 2 * (n_in * rt * tt * 4 + rt * tp * 4) + tt * tp * 4 + (2 << 20)
    vmem_limit = int(min(max(vmem_est, 16 << 20), 64 << 20))

    cost = pl.CostEstimate(
        flops=int(2 * n_in * R * T * tt * P),  # MXU work, hidden under HBM traffic
        transcendentals=0,
        bytes_accessed=int((1 + P) * R * T * itemsize + (R * T * 4) * (n_in - 1)),
    )
    cparams = pltpu.CompilerParams(
        dimension_semantics=("parallel", "parallel"),
        vmem_limit_bytes=vmem_limit,
    )

    x_spec = pl.BlockSpec((rt, tt), lambda r, t: (r, t))
    sel_spec = pl.BlockSpec((tt, tp), lambda r, t: (0, 0))
    out_spec = pl.BlockSpec((rt, tp), lambda r, t: (r, t))
    out_shape = jax.ShapeDtypeStruct((R, TP), x.dtype)

    if indices is None:
        out2 = pl.pallas_call(
            _upsample_kernel,
            out_shape=out_shape,
            grid=grid,
            in_specs=[x_spec, sel_spec],
            out_specs=out_spec,
            compiler_params=cparams,
            cost_estimate=cost,
        )(x2, sel)
    else:
        # TODO(synk): assumes window-local indices (idx[b,c,t] in [t*P, (t+1)*P)), as
        # produced by max_pool1d(kernel_size=stride=pool_size); fully arbitrary indices
        # in [0, T*P) would need the output time axis tiled against every input tile.
        idx2 = indices.reshape(R, T).astype(jnp.int32)
        out2 = pl.pallas_call(
            _maxunpool_kernel,
            out_shape=out_shape,
            grid=grid,
            in_specs=[x_spec, x_spec, sel_spec],
            out_specs=out_spec,
            compiler_params=cparams,
            cost_estimate=cost,
        )(x2, idx2, sel)

    out = out2.reshape(B, C, TP)

    if seq_len is not None:
        # Faithful to the reference module: seq_len * pool_size, then np.maximum with
        # the full output length (as written in the original forward()).
        seq_len = np.asarray(seq_len) * pool_size
        seq_len = np.maximum(seq_len, out.shape[-1])
    return out, seq_len


if __name__ == "__main__":
    key = jax.random.PRNGKey(0)

    def ref_upsample(x, P):
        return jnp.repeat(x, P, axis=-1)  # F.interpolate nearest

    def ref_maxunpool(x, idx, P):
        B, C, T = x.shape
        out = np.zeros((B, C, T * P), dtype=np.asarray(x).dtype)
        np.put_along_axis(out, np.asarray(idx), np.asarray(x), axis=-1)
        return out

    def make_indices(k, B, C, T, P):
        # Indices as produced by max_pool1d(return_indices=True):
        # indices[b, c, t] in [t*P, (t+1)*P)
        offs = jax.random.randint(k, (B, C, T), 0, P, dtype=jnp.int32)
        return jnp.arange(T, dtype=jnp.int32)[None, None, :] * P + offs

    configs = [
        (2, 4, 8, 2),      # tiny, full-array blocks
        (2, 8, 256, 2),    # exercises 128-aligned time tiling + folded B*C rows
    ]
    for (B, C, T, P) in configs:
        kx, ki, key = jax.random.split(key, 3)
        x = jax.random.normal(kx, (B, C, T), dtype=jnp.float32)
        seq_len = np.arange(1, B + 1, dtype=np.int64) * (T // 2)
        TP = T * P

        # --- mode 1: nearest upsampling (indices=None) ---
        out_up, seq_up = unpool1d(x, P, seq_len=seq_len, indices=None)
        out_up = jax.block_until_ready(out_up)
        np.testing.assert_allclose(np.asarray(out_up), np.asarray(ref_upsample(x, P)),
                                   rtol=1e-6, atol=1e-6)
        assert out_up.shape == (B, C, TP)
        assert np.array_equal(seq_up, np.maximum(seq_len * P, TP))

        # --- mode 2: max-unpooling (indices provided) ---
        indices = make_indices(ki, B, C, T, P)
        out_un, seq_un = unpool1d(x, P, seq_len=seq_len, indices=indices)
        out_un = jax.block_until_ready(out_un)
        np.testing.assert_allclose(np.asarray(out_un), ref_maxunpool(x, indices, P),
                                   rtol=1e-6, atol=1e-6)
        assert np.array_equal(seq_un, np.maximum(seq_len * P, TP))

    # --- pool_size < 2: identity ---
    x = jax.random.normal(key, (2, 4, 8), dtype=jnp.float32)
    seq_len = np.array([8, 6], dtype=np.int64)
    out_id, seq_id = unpool1d(x, 1, seq_len=seq_len)
    assert out_id is x and np.array_equal(seq_id, seq_len)

    print("KERNEL_OK")
</pallas_src>

<mosaic_0001>
module attributes {stable_mosaic.version = 11 : i64} {
  func.func @_upsample_kernel(%arg0: i32, %arg1: i32, %arg2: memref<8x8xf32, #tpu.memory_space<vmem>>, %arg3: memref<8x16xf32, #tpu.memory_space<vmem>>, %arg4: memref<8x16xf32, #tpu.memory_space<vmem>>) attributes {dimension_semantics = [#tpu.dimension_semantics<parallel>, #tpu.dimension_semantics<parallel>], iteration_bounds = array<i64: 1, 1>, scalar_prefetch = 0 : i64, scratch_operands = 0 : i64, tpu.core_type = #tpu.core_type<tc>, window_params = [{transform_indices = @transform_0, window_bounds = array<i64: 8, 8>}, {pipeline_mode = #tpu.pipeline_mode<synchronous>, transform_indices = @transform_1, window_bounds = array<i64: 8, 16>}, {transform_indices = @transform_2, window_bounds = array<i64: 8, 16>}]} {
    %c0 = arith.constant 0 : index
    %c0_0 = arith.constant 0 : index
    %0 = vector.load %arg2[%c0, %c0_0] : memref<8x8xf32, #tpu.memory_space<vmem>>, vector<8x8xf32>
    %c0_1 = arith.constant 0 : index
    %c0_2 = arith.constant 0 : index
    %1 = vector.load %arg3[%c0_1, %c0_2] : memref<8x16xf32, #tpu.memory_space<vmem>>, vector<8x16xf32>
    %cst = arith.constant dense<0.000000e+00> : vector<8x16xf32>
    %2 = tpu.matmul %0, %1, %cst {dimension_numbers = #tpu.dot_dimension_numbers<[1], [0], [0], [1], [0, 0, 1, 1], [], []>} : vector<8x8xf32>, vector<8x16xf32>, vector<8x16xf32> -> vector<8x16xf32>
    %c0_3 = arith.constant 0 : index
    %c0_4 = arith.constant 0 : index
    %3 = vector.load %arg4[%c0_3, %c0_4] : memref<8x16xf32, #tpu.memory_space<vmem>>, vector<8x16xf32>
    tpu.vector_store %arg4[%c0_3, %c0_4], %2 {strides = array<i32>} : memref<8x16xf32, #tpu.memory_space<vmem>>, vector<8x16xf32>,
    return
  }
  func.func @transform_0(%arg0: i32, %arg1: i32) -> (i32, i32) {
    %c0_i32 = arith.constant 0 : i32
    return %arg0, %arg1 : i32, i32
  }
  func.func @transform_1(%arg0: i32, %arg1: i32) -> (i32, i32) {
    %c0_i32 = arith.constant 0 : i32
    %c0_i32_0 = arith.constant 0 : i32
    %c0_i32_1 = arith.constant 0 : i32
    return %c0_i32, %c0_i32_0 : i32, i32
  }
  func.func @transform_2(%arg0: i32, %arg1: i32) -> (i32, i32) {
    %c0_i32 = arith.constant 0 : i32
    return %arg0, %arg1 : i32, i32
  }
}

</mosaic_0001>

<bundles_post_ra>
// kernel: tpu_custom_call.1
= control target key start
LH: loop header
LB: loop body
LE: loop exit
PB: predicated region body
PF: predicated region fallthrough
CT: control target
= control target key end

     0   :  { %7 = vsyncpa [#allocation3], 0  ;;  %s238_s0 = inlined_call_operand.hbm [shape: f32[8,8], index: 0, kind: input, shape index: {}]   ;;  %s239_s1 = inlined_call_operand.hbm [shape: f32[8,16], index: 1, kind: input, shape index: {}]   ;;  %s240_s2 = inlined_call_operand.hbm [shape: f32[8,16], index: 2, kind: output, shape index: {}]  }
   0x1   :  { %8 = vsyncpa [#allocation6], 0 }
   0x2   :  { %9 = vsyncpa [#allocation4], 0  ;;  %s209_s9 = smov [#allocation2]   ;;  %s210_s11 = smov [#allocation5]  }
   0x3   :  { %s16_s10 = sshll.u32 %s209_s9, 4  ;;  %s26_s12 = sshll.u32 %s210_s11, 4  ;;  %s17_s10 = int_to_ptr.vmem [resolvable:$true] %s16_s10  ;;  %s27_s12 = int_to_ptr.vmem [resolvable:$true] %s26_s12 }
   0x4   :  { %s151_s13 = scalar_lea.vmem %s17_s10, 128  ;;  %p156_p1 = scmp.lt.s32.totalorder %s17_s10, %s17_s10 }
   0x5   :  { %p152_p0 = scmp.ne.s32.totalorder %s17_s10, %s151_s13  ;;  %p157_p2 = scmp.lt.s32.totalorder %s151_s13, %s151_s13 }
   0x7   :  { %p158_p3 = por %p157_p2, %p156_p1 }
   0x9   :  { %p159_p4 = pnand %p158_p3, %p152_p0 }
   0xb   :  { %162 = shalt.err (!%p159_p4)
}
   0xc   :  { %19 = dma.hbm_to_vmem [thread:$0]  %s238_s0, 128, %s17_s10, [#allocation3]  }
   0xd   :  { %s171_s16 = scalar_lea.vmem %s27_s12, 128  ;;  %p176_p6 = scmp.lt.s32.totalorder %s27_s12, %s27_s12 }
   0xe   :  { %p172_p5 = scmp.ne.s32.totalorder %s27_s12, %s171_s16  ;;  %p177_p7 = scmp.lt.s32.totalorder %s171_s16, %s171_s16 }
  0x10   :  { %p178_p8 = por %p177_p7, %p176_p6 }
  0x12   :  { %p179_p9 = pnand %p178_p8, %p172_p5 }
  0x14   :  { %182 = shalt.err (!%p179_p9)
}
  0x15   :  { %29 = dma.hbm_to_vmem [thread:$0]  %s239_s1, 128, %s27_s12, [#allocation6]  }
  0x16   :  { %203 = dma.done.wait [#allocation3], 128  }
  0x17   :  { %204 = vsyncadd [#allocation3], 4294967168 }
  0x18   :  { %205 = dma.done.wait [#allocation6], 128  }
  0x19   :  { %206 = vsyncadd [#allocation6], 4294967168  ;;  %v211_v0 = vmov 0.0   ;;  %vm212_vm0 = vmmov 0   ;;  %vm38_vm1 = vcmask 64512   ;;  %v37_v1 = vld [vmem:[#allocation5] sm:$0xff] }
  0x1a   :  { %133 = vmatprep.subr.mxu0 %v211_v0  ;;  %135 = vmatprep.mubr.msk.f32.mxu0 %vm212_vm0, %v211_v0  ;;  %v36_v2 = vld [vmem:[#allocation2] sm:$0xff]  ;;  %s213_s0 = smov [#allocation7]   ;;  %vm112_vm2 = vcmask 130048  }
  0x1b   :  { %134 = vmatpush3.msra.mxu0 %v37_v1  ;;  %s120_s19 = sshll.u32 %s213_s0, 4  ;;  %s121_s19 = int_to_ptr.vmem [resolvable:$true] %s120_s19 }
  0x1c   :  { %136 = vmatmul.mubr.msk.f32.vlgmr.msra.gmra.mxu0 %vm38_vm1, %v36_v2  ;;  %s183_s1 = scalar_lea.vmem %s121_s19, 128  ;;  %p188_p11 = scmp.lt.s32.totalorder %s121_s19, %s121_s19 }
  0x1d   :  { %p184_p10 = scmp.ne.s32.totalorder %s121_s19, %s183_s1  ;;  %p189_p12 = scmp.lt.s32.totalorder %s183_s1, %s183_s1 }
  0x1f   :  { %p190_p13 = por %p189_p12, %p188_p11 }
  0x21   :  { %p191_p0 = pnand %p190_p13, %p184_p10 }
  0xdc   :  { %v108_v3 = vpop.f32.mrf.mxu0 }
  0xdd   :  { %113 = vst.msk [vmem:[#allocation7] sm:$0xff] %vm112_vm2, %v108_v3 }
  0xde   :  { %v137_v4 = vpop.f32.mrf.mxu0 }
  0xdf   :  { %194 = shalt.err (!%p191_p0)
}
  0xe0   :  { %123 = dma.vmem_to_hbm [thread:$0]  %s121_s19, 128, %s240_s2, [#allocation4]  }
  0xe1   :  { %207 = dma.done.wait [#allocation4], 128  }
  0xe2   :  { %208 = vsyncadd [#allocation4], 4294967168 }
  0xe3   :  { %127 = vsyncpa [#allocation3], 1 }
  0xe4   :  { %128 = vsyncpa [#allocation6], 1 }
  0xe5   :  { %129 = vsyncpa [#allocation4], 1 }

</bundles_post_ra>
